<compile_context>
chip_gen: v6e
topology: v6e:2x2x1
jax: 0.10.0
libtpu: 0.0.40
codegen_flags: <defaults>
</compile_context>

<pallas_src>
import functools

import jax
import jax.numpy as jnp
from jax.experimental import pallas as pl
from jax.experimental.pallas import tpu as pltpu


# ---------------------------------------------------------------------------
# Fused (LayerNorm) + matmul + bias (+ GELU) (+ residual) kernel
# ---------------------------------------------------------------------------

def _fused_linear_kernel(x_ref, w_ref, b_ref, *rest,
                         apply_ln, activation, add_residual, eps):
    idx = 0
    if apply_ln:
        g_ref, bt_ref = rest[0], rest[1]
        idx = 2
    if add_residual:
        r_ref = rest[idx]
        idx += 1
    o_ref = rest[idx]

    x = x_ref[...].astype(jnp.float32)                       # (tm, K)
    if apply_ln:
        mu = jnp.mean(x, axis=-1, keepdims=True)
        var = jnp.mean(jnp.square(x - mu), axis=-1, keepdims=True)
        x = (x - mu) * jax.lax.rsqrt(var + eps)
        x = x * g_ref[...] + bt_ref[...]
    acc = jnp.dot(x, w_ref[...].astype(jnp.float32),
                  preferred_element_type=jnp.float32)        # (tm, tn)
    acc = acc + b_ref[...]
    if activation == "gelu_new":
        # GPT2 "gelu_new": 0.5*x*(1+tanh(sqrt(2/pi)*(x+0.044715*x^3)))
        acc = 0.5 * acc * (1.0 + jnp.tanh(
            0.7978845608028654 * (acc + 0.044715 * acc * acc * acc)))
    if add_residual:
        acc = acc + r_ref[...].astype(jnp.float32)
    o_ref[...] = acc.astype(o_ref.dtype)


def fused_linear(x, w, b, *, gamma=None, beta=None, residual=None,
                 activation=None, eps=1e-5, block_m=256, block_n=256):
    """out = [LN(x)] @ W + b [+GELU] [+ residual], tiled over (M, N), full K."""
    M, K = x.shape
    N = w.shape[1]
    tm = min(block_m, M)
    tn = min(block_n, N)
    apply_ln = gamma is not None
    add_residual = residual is not None

    in_specs = [
        pl.BlockSpec((tm, K), lambda i, j: (i, 0)),
        pl.BlockSpec((K, tn), lambda i, j: (0, j)),
        pl.BlockSpec((1, tn), lambda i, j: (0, j)),
    ]
    args = [x, w, b.reshape(1, N)]
    if apply_ln:
        in_specs += [pl.BlockSpec((1, K), lambda i, j: (0, 0)),
                     pl.BlockSpec((1, K), lambda i, j: (0, 0))]
        args += [gamma.reshape(1, K), beta.reshape(1, K)]
    if add_residual:
        in_specs.append(pl.BlockSpec((tm, tn), lambda i, j: (i, j)))
        args.append(residual)

    kernel = functools.partial(_fused_linear_kernel, apply_ln=apply_ln,
                               activation=activation,
                               add_residual=add_residual, eps=eps)
    return pl.pallas_call(
        kernel,
        out_shape=jax.ShapeDtypeStruct((M, N), jnp.float32),
        grid=(pl.cdiv(M, tm), pl.cdiv(N, tn)),
        in_specs=in_specs,
        out_specs=pl.BlockSpec((tm, tn), lambda i, j: (i, j)),
        compiler_params=pltpu.CompilerParams(
            dimension_semantics=("parallel", "parallel")),
    )(*args)


# ---------------------------------------------------------------------------
# Standalone LayerNorm (only used for ln_f), tiled over rows
# ---------------------------------------------------------------------------

def _layernorm_kernel(x_ref, g_ref, b_ref, o_ref, *, eps):
    x = x_ref[...].astype(jnp.float32)
    mu = jnp.mean(x, axis=-1, keepdims=True)
    var = jnp.mean(jnp.square(x - mu), axis=-1, keepdims=True)
    y = (x - mu) * jax.lax.rsqrt(var + eps)
    o_ref[...] = (y * g_ref[...] + b_ref[...]).astype(o_ref.dtype)


def layernorm(x, gamma, beta, eps=1e-5, block_m=512):
    M, D = x.shape
    tm = min(block_m, M)
    return pl.pallas_call(
        functools.partial(_layernorm_kernel, eps=eps),
        out_shape=jax.ShapeDtypeStruct((M, D), jnp.float32),
        grid=(pl.cdiv(M, tm),),
        in_specs=[
            pl.BlockSpec((tm, D), lambda i: (i, 0)),
            pl.BlockSpec((1, D), lambda i: (0, 0)),
            pl.BlockSpec((1, D), lambda i: (0, 0)),
        ],
        out_specs=pl.BlockSpec((tm, D), lambda i: (i, 0)),
        compiler_params=pltpu.CompilerParams(
            dimension_semantics=("parallel",)),
    )(x, gamma.reshape(1, D), beta.reshape(1, D))


# ---------------------------------------------------------------------------
# Multi-head attention: all heads per grid step, in-kernel causal mask
# ---------------------------------------------------------------------------

def _mha_kernel(q_ref, k_ref, v_ref, bias_ref, o_ref, *, scale, causal):
    q = q_ref[0].astype(jnp.float32)          # (H, S, Dh)
    k = k_ref[0].astype(jnp.float32)          # (H, T, Dh)
    v = v_ref[0].astype(jnp.float32)          # (H, T, Dh)
    s = jnp.einsum("hqd,hkd->hqk", q, k,
                   preferred_element_type=jnp.float32) * scale     # (H, S, T)
    if causal:
        S, T = s.shape[1], s.shape[2]
        rows = jax.lax.broadcasted_iota(jnp.int32, (S, T), 0)
        cols = jax.lax.broadcasted_iota(jnp.int32, (S, T), 1)
        # HF GPT2: masked positions replaced by masked_bias (-1e4) ...
        s = jnp.where((cols <= rows)[None, :, :], s, jnp.float32(-1e4))
    # ... then the (1 - attn_mask) * -1e4 additive padding bias is added.
    s = s + bias_ref[0].astype(jnp.float32)   # (1, T) broadcast over (H, S, T)
    m = jnp.max(s, axis=-1, keepdims=True)
    e = jnp.exp(s - m)
    p = e * pl.reciprocal(jnp.sum(e, axis=-1, keepdims=True), approx=True)
    o = jnp.einsum("hqk,hkd->hqd", p, v, preferred_element_type=jnp.float32)
    o_ref[0] = o.astype(o_ref.dtype)


def multihead_attention(q, k, v, bias, causal):
    """q: (B, H, S, Dh), k/v: (B, H, T, Dh), bias: (B, 1, T) -> (B, H, S, Dh)."""
    B, H, S, Dh = q.shape
    T = k.shape[2]
    scale = 1.0 / float(Dh) ** 0.5
    return pl.pallas_call(
        functools.partial(_mha_kernel, scale=scale, causal=causal),
        out_shape=jax.ShapeDtypeStruct((B, H, S, Dh), jnp.float32),
        grid=(B,),
        in_specs=[
            pl.BlockSpec((1, H, S, Dh), lambda b: (b, 0, 0, 0)),
            pl.BlockSpec((1, H, T, Dh), lambda b: (b, 0, 0, 0)),
            pl.BlockSpec((1, H, T, Dh), lambda b: (b, 0, 0, 0)),
            pl.BlockSpec((1, 1, T), lambda b: (b, 0, 0)),
        ],
        out_specs=pl.BlockSpec((1, H, S, Dh), lambda b: (b, 0, 0, 0)),
        compiler_params=pltpu.CompilerParams(
            dimension_semantics=("parallel",)),
    )(q, k, v, bias)


# ---------------------------------------------------------------------------
# Fused lm_head (tied wte, untransposed) + masked cross entropy
#   grid = (M/tm, V/tv); vocab axis is an online-LSE reduction ("arbitrary").
# ---------------------------------------------------------------------------

def _lm_head_ce_kernel(h_ref, wte_ref, lbl_ref, msk_ref,
                       logits_ref, loss_ref, m_sc, l_sc, lab_sc, *, tv):
    v_idx = pl.program_id(1)

    @pl.when(v_idx == 0)
    def _():
        m_sc[...] = jnp.full_like(m_sc, -jnp.inf)
        l_sc[...] = jnp.zeros_like(l_sc)
        lab_sc[...] = jnp.zeros_like(lab_sc)

    h = h_ref[...].astype(jnp.float32)                       # (tm, D)
    w = wte_ref[...].astype(jnp.float32)                     # (tv, D)
    # logits tile = h @ wte.T, contraction on the last dims (no host transpose)
    logits = jax.lax.dot_general(h, w, (((1,), (1,)), ((), ())),
                                 preferred_element_type=jnp.float32)  # (tm, tv)
    logits_ref[...] = logits.astype(logits_ref.dtype)

    # label logit via iota compare (no one-hot materialized)
    col = jax.lax.broadcasted_iota(jnp.int32, logits.shape, 1) + v_idx * tv
    lab_sc[...] += jnp.sum(jnp.where(col == lbl_ref[...], logits, 0.0),
                           axis=-1, keepdims=True)

    # online log-sum-exp over the vocab tiles
    m_old = m_sc[...]
    m_new = jnp.maximum(m_old, jnp.max(logits, axis=-1, keepdims=True))
    l_sc[...] = (l_sc[...] * jnp.exp(m_old - m_new)
                 + jnp.sum(jnp.exp(logits - m_new), axis=-1, keepdims=True))
    m_sc[...] = m_new

    @pl.when(v_idx == pl.num_programs(1) - 1)
    def _():
        lse = m_sc[...] + jnp.log(l_sc[...])
        loss_ref[...] = (lse - lab_sc[...]) * msk_ref[...]


def lm_head_and_masked_ce(h_ln, wte, labels, mask, block_m=256, block_v=512):
    """h_ln: (M, D) post-ln_f hidden; wte: (V, D); labels/mask: (M, 1).
    Returns (logits (M, V), per-row masked loss (M, 1))."""
    M, D = h_ln.shape
    V = wte.shape[0]
    tm = min(block_m, M)
    tv = min(block_v, V)
    return pl.pallas_call(
        functools.partial(_lm_head_ce_kernel, tv=tv),
        out_shape=(jax.ShapeDtypeStruct((M, V), jnp.float32),
                   jax.ShapeDtypeStruct((M, 1), jnp.float32)),
        grid=(pl.cdiv(M, tm), pl.cdiv(V, tv)),
        in_specs=[
            pl.BlockSpec((tm, D), lambda i, v: (i, 0)),
            pl.BlockSpec((tv, D), lambda i, v: (v, 0)),
            pl.BlockSpec((tm, 1), lambda i, v: (i, 0)),
            pl.BlockSpec((tm, 1), lambda i, v: (i, 0)),
        ],
        out_specs=[
            pl.BlockSpec((tm, tv), lambda i, v: (i, v)),
            pl.BlockSpec((tm, 1), lambda i, v: (i, 0)),
        ],
        scratch_shapes=[pltpu.VMEM((tm, 1), jnp.float32)] * 3,
        compiler_params=pltpu.CompilerParams(
            dimension_semantics=("parallel", "arbitrary")),
    )(h_ln, wte, labels, mask)


# ---------------------------------------------------------------------------
# GPT2 decoder with cross attention (glue around the Pallas kernels)
# ---------------------------------------------------------------------------

def gpt2_decode(params, input_ids, attention_mask, encoder_hidden, encoder_mask,
                n_head):
    """Returns ln_f-normalized hidden states of shape (B*S, D)."""
    B, S = input_ids.shape
    V, D = params["wte"].shape
    Dh = D // n_head
    _, N_mem, _ = encoder_hidden.shape
    M = B * S

    # embeddings (gather is JAX glue)
    h = params["wte"][input_ids] + params["wpe"][:S][None, :, :]
    h = h.reshape(M, D)
    enc = encoder_hidden.reshape(B * N_mem, D).astype(jnp.float32)

    # additive padding biases, HF-style
    self_bias = ((1.0 - attention_mask.astype(jnp.float32)) * -1e4
                 ).reshape(B, 1, S)
    cross_bias = ((1.0 - encoder_mask.astype(jnp.float32)) * -1e4
                  ).reshape(B, 1, N_mem)

    for layer in params["layers"]:
        # ---- self attention: LN1 fused into c_attn, residual fused in proj --
        g1, b1 = layer["ln_1"]
        qkv = fused_linear(h, *layer["attn_c_attn"], gamma=g1, beta=b1)   # (M, 3D)
        qkv5 = qkv.reshape(B, S, 3, n_head, Dh).transpose(2, 0, 3, 1, 4)  # (3,B,H,S,Dh)
        a = multihead_attention(qkv5[0], qkv5[1], qkv5[2], self_bias,
                                causal=True)                              # (B,H,S,Dh)
        a = a.transpose(0, 2, 1, 3).reshape(M, D)
        h = fused_linear(a, *layer["attn_c_proj"], residual=h)

        # ---- cross attention: LNx fused into q_attn, residual fused in proj -
        gx, bx = layer["ln_cross"]
        q = fused_linear(h, *layer["cross_q_attn"], gamma=gx, beta=bx)    # (M, D)
        kv = fused_linear(enc, *layer["cross_c_attn"])                    # (B*N, 2D)
        q4 = q.reshape(B, S, n_head, Dh).transpose(0, 2, 1, 3)            # (B,H,S,Dh)
        kv5 = kv.reshape(B, N_mem, 2, n_head, Dh).transpose(2, 0, 3, 1, 4)
        a = multihead_attention(q4, kv5[0], kv5[1], cross_bias, causal=False)
        a = a.transpose(0, 2, 1, 3).reshape(M, D)
        h = fused_linear(a, *layer["cross_c_proj"], residual=h)

        # ---- MLP: LN2 fused into c_fc (+GELU), residual fused in c_proj -----
        g2, b2 = layer["ln_2"]
        x = fused_linear(h, *layer["mlp_c_fc"], gamma=g2, beta=b2,
                         activation="gelu_new")
        h = fused_linear(x, *layer["mlp_c_proj"], residual=h)

    return layernorm(h, *params["ln_f"])


def video_gpt2_forward(params, memory_embed, memory_mask,
                       target_input_ids, target_input_mask,
                       pos_embed=None, n_head=4):
    """Mirrors VideoGPT2.forward: returns (logits, loss)."""
    if pos_embed is not None:
        memory_embed = memory_embed + pos_embed

    B, S = target_input_ids.shape
    V, D = params["wte"].shape

    h_ln = gpt2_decode(params, target_input_ids, target_input_mask,
                       memory_embed, memory_mask, n_head)          # (B*S, D)

    # Shifted-CE bookkeeping: position s is trained against token s+1; the
    # last position of each sequence gets mask 0 so it contributes nothing.
    labels = jnp.concatenate(
        [target_input_ids[:, 1:], jnp.zeros((B, 1), jnp.int32)], axis=1
    ).reshape(B * S, 1)
    ce_mask = jnp.concatenate(
        [target_input_mask[:, 1:].astype(jnp.float32),
         jnp.zeros((B, 1), jnp.float32)], axis=1
    ).reshape(B * S, 1)

    logits2d, row_loss = lm_head_and_masked_ce(h_ln, params["wte"],
                                               labels, ce_mask)
    loss = jnp.sum(row_loss) / jnp.maximum(jnp.sum(ce_mask), 1.0)
    logits = logits2d.reshape(B, S, V)
    return logits, loss


# ---------------------------------------------------------------------------
# Deterministic parameter init (synthetic, no checkpoint)
# ---------------------------------------------------------------------------

def init_params(key, vocab, n_ctx, d_model, n_layer):
    n_keys = 2 + n_layer * 7
    keys = iter(jax.random.split(key, n_keys))

    def w(shape, std=0.02):
        return jax.random.normal(next(keys), shape, jnp.float32) * std

    ones = jnp.ones((d_model,), jnp.float32)
    zeros = jnp.zeros((d_model,), jnp.float32)

    params = {
        "wte": w((vocab, d_model)),
        "wpe": w((n_ctx, d_model)),
        "ln_f": (ones, zeros),
        "layers": [],
    }
    for _ in range(n_layer):
        layer = {
            "ln_1": (ones, zeros),
            "attn_c_attn": (w((d_model, 3 * d_model)),
                            jnp.zeros((3 * d_model,), jnp.float32)),
            "attn_c_proj": (w((d_model, d_model)), zeros),
            "ln_cross": (ones, zeros),
            "cross_q_attn": (w((d_model, d_model)), zeros),
            "cross_c_attn": (w((d_model, 2 * d_model)),
                             jnp.zeros((2 * d_model,), jnp.float32)),
            "cross_c_proj": (w((d_model, d_model)), zeros),
            "ln_2": (ones, zeros),
            "mlp_c_fc": (w((d_model, 4 * d_model)),
                         jnp.zeros((4 * d_model,), jnp.float32)),
            "mlp_c_proj": (w((4 * d_model, d_model)), zeros),
        }
        params["layers"].append(layer)
    return params


# ---------------------------------------------------------------------------
# Main
# ---------------------------------------------------------------------------

if __name__ == "__main__":
    B, S, N_MEM, D, H, L, V, CTX = 2, 8, 16, 32, 4, 2, 64, 16

    root = jax.random.PRNGKey(0)
    k_mem, k_ids, k_pos, k_par = jax.random.split(root, 4)

    memory_embed = jax.random.normal(k_mem, (B, N_MEM, D), jnp.float32)
    memory_mask = jnp.ones((B, N_MEM), jnp.float32).at[1, 12:].set(0.0)
    target_input_ids = jax.random.randint(k_ids, (B, S), 0, V, dtype=jnp.int32)
    target_input_mask = jnp.ones((B, S), jnp.float32).at[1, 6:].set(0.0)
    pos_embed = jax.random.normal(k_pos, (B, N_MEM, D), jnp.float32) * 0.02

    params = init_params(k_par, vocab=V, n_ctx=CTX, d_model=D, n_layer=L)

    logits, loss = video_gpt2_forward(params, memory_embed, memory_mask,
                                      target_input_ids, target_input_mask,
                                      pos_embed=pos_embed, n_head=H)
    jax.block_until_ready((logits, loss))

    assert logits.shape == (B, S, V)
    assert loss.shape == ()
    assert bool(jnp.isfinite(loss))
    assert bool(jnp.all(jnp.isfinite(logits)))
    print("KERNEL_OK")
</pallas_src>

<mosaic_0001>
module attributes {stable_mosaic.version = 11 : i64} {
  func.func @_fused_linear_kernel(%arg0: i32, %arg1: i32, %arg2: memref<16x32xf32, #tpu.memory_space<vmem>>, %arg3: memref<32x96xf32, #tpu.memory_space<vmem>>, %arg4: memref<1x96xf32, #tpu.memory_space<vmem>>, %arg5: memref<1x32xf32, #tpu.memory_space<vmem>>, %arg6: memref<1x32xf32, #tpu.memory_space<vmem>>, %arg7: memref<16x96xf32, #tpu.memory_space<vmem>>) attributes {dimension_semantics = [#tpu.dimension_semantics<parallel>, #tpu.dimension_semantics<parallel>], iteration_bounds = array<i64: 1, 1>, scalar_prefetch = 0 : i64, scratch_operands = 0 : i64, tpu.core_type = #tpu.core_type<tc>, window_params = [{transform_indices = @transform_0, window_bounds = array<i64: 16, 32>}, {transform_indices = @transform_1, window_bounds = array<i64: 32, 96>}, {transform_indices = @transform_2, window_bounds = array<i64: 1, 96>}, {pipeline_mode = #tpu.pipeline_mode<synchronous>, transform_indices = @transform_3, window_bounds = array<i64: 1, 32>}, {pipeline_mode = #tpu.pipeline_mode<synchronous>, transform_indices = @transform_4, window_bounds = array<i64: 1, 32>}, {transform_indices = @transform_5, window_bounds = array<i64: 16, 96>}]} {
    %c0 = arith.constant 0 : index
    %c0_0 = arith.constant 0 : index
    %0 = vector.load %arg2[%c0, %c0_0] : memref<16x32xf32, #tpu.memory_space<vmem>>, vector<16x32xf32>
    %cst = arith.constant dense<0.000000e+00> : vector<16xf32>
    %1 = vector.multi_reduction <add>, %0, %cst [1] : vector<16x32xf32> to vector<16xf32>
    %2 = vector.shape_cast %1 : vector<16xf32> to vector<16x1xf32>
    %cst_1 = arith.constant 3.200000e+01 : f32
    %3 = vector.broadcast %cst_1 : f32 to vector<16x1xf32>
    %4 = arith.divf %2, %3 : vector<16x1xf32>
    %5 = vector.broadcast %4 : vector<16x1xf32> to vector<16x32xf32>
    %6 = arith.subf %0, %5 : vector<16x32xf32>
    %7 = arith.mulf %6, %6 : vector<16x32xf32>
    %cst_2 = arith.constant dense<0.000000e+00> : vector<16xf32>
    %8 = vector.multi_reduction <add>, %7, %cst_2 [1] : vector<16x32xf32> to vector<16xf32>
    %9 = vector.shape_cast %8 : vector<16xf32> to vector<16x1xf32>
    %cst_3 = arith.constant 3.200000e+01 : f32
    %10 = vector.broadcast %cst_3 : f32 to vector<16x1xf32>
    %11 = arith.divf %9, %10 : vector<16x1xf32>
    %12 = vector.broadcast %4 : vector<16x1xf32> to vector<16x32xf32>
    %13 = arith.subf %0, %12 : vector<16x32xf32>
    %cst_4 = arith.constant 9.99999974E-6 : f32
    %14 = vector.broadcast %cst_4 : f32 to vector<16x1xf32>
    %15 = arith.addf %11, %14 : vector<16x1xf32>
    %16 = math.rsqrt %15 : vector<16x1xf32>
    %17 = vector.broadcast %16 : vector<16x1xf32> to vector<16x32xf32>
    %18 = arith.mulf %13, %17 : vector<16x32xf32>
    %c0_5 = arith.constant 0 : index
    %c0_6 = arith.constant 0 : index
    %19 = vector.load %arg5[%c0_5, %c0_6] : memref<1x32xf32, #tpu.memory_space<vmem>>, vector<1x32xf32>
    %20 = vector.broadcast %19 : vector<1x32xf32> to vector<16x32xf32>
    %21 = arith.mulf %18, %20 : vector<16x32xf32>
    %c0_7 = arith.constant 0 : index
    %c0_8 = arith.constant 0 : index
    %22 = vector.load %arg6[%c0_7, %c0_8] : memref<1x32xf32, #tpu.memory_space<vmem>>, vector<1x32xf32>
    %23 = vector.broadcast %22 : vector<1x32xf32> to vector<16x32xf32>
    %24 = arith.addf %21, %23 : vector<16x32xf32>
    %c0_9 = arith.constant 0 : index
    %c0_10 = arith.constant 0 : index
    %25 = vector.load %arg3[%c0_9, %c0_10] : memref<32x96xf32, #tpu.memory_space<vmem>>, vector<32x96xf32>
    %cst_11 = arith.constant dense<0.000000e+00> : vector<16x96xf32>
    %26 = tpu.matmul %24, %25, %cst_11 {dimension_numbers = #tpu.dot_dimension_numbers<[1], [0], [0], [1], [0, 0, 1, 1], [], []>} : vector<16x32xf32>, vector<32x96xf32>, vector<16x96xf32> -> vector<16x96xf32>
    %c0_12 = arith.constant 0 : index
    %c0_13 = arith.constant 0 : index
    %27 = vector.load %arg4[%c0_12, %c0_13] : memref<1x96xf32, #tpu.memory_space<vmem>>, vector<1x96xf32>
    %28 = vector.broadcast %27 : vector<1x96xf32> to vector<16x96xf32>
    %29 = arith.addf %26, %28 : vector<16x96xf32>
    %c0_14 = arith.constant 0 : index
    %c0_15 = arith.constant 0 : index
    %30 = vector.load %arg7[%c0_14, %c0_15] : memref<16x96xf32, #tpu.memory_space<vmem>>, vector<16x96xf32>
    tpu.vector_store %arg7[%c0_14, %c0_15], %29 {strides = array<i32>} : memref<16x96xf32, #tpu.memory_space<vmem>>, vector<16x96xf32>,
    return
  }
  func.func @transform_0(%arg0: i32, %arg1: i32) -> (i32, i32) {
    %c0_i32 = arith.constant 0 : i32
    %c0_i32_0 = arith.constant 0 : i32
    return %arg0, %c0_i32 : i32, i32
  }
  func.func @transform_1(%arg0: i32, %arg1: i32) -> (i32, i32) {
    %c0_i32 = arith.constant 0 : i32
    %c0_i32_0 = arith.constant 0 : i32
    return %c0_i32, %arg1 : i32, i32
  }
  func.func @transform_2(%arg0: i32, %arg1: i32) -> (i32, i32) {
    %c0_i32 = arith.constant 0 : i32
    %c0_i32_0 = arith.constant 0 : i32
    return %c0_i32, %arg1 : i32, i32
  }
  func.func @transform_3(%arg0: i32, %arg1: i32) -> (i32, i32) {
    %c0_i32 = arith.constant 0 : i32
    %c0_i32_0 = arith.constant 0 : i32
    %c0_i32_1 = arith.constant 0 : i32
    return %c0_i32, %c0_i32_0 : i32, i32
  }
  func.func @transform_4(%arg0: i32, %arg1: i32) -> (i32, i32) {
    %c0_i32 = arith.constant 0 : i32
    %c0_i32_0 = arith.constant 0 : i32
    %c0_i32_1 = arith.constant 0 : i32
    return %c0_i32, %c0_i32_0 : i32, i32
  }
  func.func @transform_5(%arg0: i32, %arg1: i32) -> (i32, i32) {
    %c0_i32 = arith.constant 0 : i32
    return %arg0, %arg1 : i32, i32
  }
}

</mosaic_0001>

<bundles_post_ra>
// kernel: tpu_custom_call.1
= control target key start
LH: loop header
LB: loop body
LE: loop exit
PB: predicated region body
PF: predicated region fallthrough
CT: control target
= control target key end

     0   :  { %10 = vsyncpa [#allocation3], 0  ;;  %s375_s0 = inlined_call_operand.hbm [shape: f32[16,32], index: 0, kind: input, shape index: {}]   ;;  %s376_s1 = inlined_call_operand.hbm [shape: f32[32,96], index: 1, kind: input, shape index: {}]   ;;  %s377_s2 = inlined_call_operand.vmem [shape: f32[1,96], index: 2, kind: input, shape index: {}]   ;;  %s378_s3 = inlined_call_operand.vmem [shape: f32[1,32], index: 3, kind: input, shape index: {}]   ;;  %s379_s4 = inlined_call_operand.vmem [shape: f32[1,32], index: 4, kind: input, shape index: {}]   ;;  %s380_s5 = inlined_call_operand.hbm [shape: f32[16,96], index: 5, kind: output, shape index: {}]  }
   0x1   :  { %11 = vsyncpa [#allocation6], 0 }
   0x2   :  { %12 = vsyncpa [#allocation4], 0  ;;  %s307_s18 = smov [#allocation2]  }
   0x3   :  { %s18_s19 = sshll.u32 %s307_s18, 4  ;;  %s19_s19 = int_to_ptr.vmem [resolvable:$true] %s18_s19 }
   0x4   :  { %s249_s20 = scalar_lea.vmem %s19_s19, 256  ;;  %p254_p1 = scmp.lt.s32.totalorder %s19_s19, %s19_s19 }
   0x5   :  { %p250_p0 = scmp.ne.s32.totalorder %s19_s19, %s249_s20  ;;  %p255_p2 = scmp.lt.s32.totalorder %s249_s20, %s249_s20 }
   0x7   :  { %p256_p3 = por %p255_p2, %p254_p1 }
   0x9   :  { %p257_p4 = pnand %p256_p3, %p250_p0 }
   0xb   :  { %260 = shalt.err (!%p257_p4)
}
   0xc   :  { %s308_s21 = smov 128   ;;  %s309_s22 = smov 8  }
   0xd   :  { %24 = dma.hbm_to_vmem [thread:$0]  %s375_s0, 256, %s19_s19, [#allocation3], %s308_s21, %s308_s21, %s309_s22  }
   0xe   :  { %s310_s25 = smov [#allocation5]  }
   0xf   :  { %s30_s26 = sshll.u32 %s310_s25, 4  ;;  %s31_s26 = int_to_ptr.vmem [resolvable:$true] %s30_s26 }
  0x10   :  { %s269_s27 = scalar_lea.vmem %s31_s26, 512  ;;  %p274_p6 = scmp.lt.s32.totalorder %s31_s26, %s31_s26 }
  0x11   :  { %p270_p5 = scmp.ne.s32.totalorder %s31_s26, %s269_s27  ;;  %p275_p7 = scmp.lt.s32.totalorder %s269_s27, %s269_s27 }
  0x13   :  { %p276_p8 = por %p275_p7, %p274_p6 }
  0x15   :  { %p277_p9 = pnand %p276_p8, %p270_p5 }
  0x17   :  { %280 = shalt.err (!%p277_p9)
}
  0x18   :  { %36 = dma.hbm_to_vmem [thread:$0]  %s376_s1, 512, %s31_s26, [#allocation6], %s308_s21, %s308_s21, %s309_s22  }
  0x19   :  { %301 = dma.done.wait [#allocation3], 256  }
  0x1a   :  { %302 = vsyncadd [#allocation3], 4294967040 }
  0x1b   :  { %303 = dma.done.wait [#allocation6], 512  }
  0x1c   :  { %304 = vsyncadd [#allocation6], 4294966784  ;;  %vm51_vm0 = vcmask 261120   ;;  %v49_v0 = vld [vmem:[#allocation2] sm:$0xff]  ;;  %v50_v1 = vld [vmem:[#allocation2 + $0x8] sm:$0xff]  ;;  %vm189_vm1 = vcmask 785408  }
  0x1d   :  { %v52_v2 = vsel %vm51_vm0, %v49_v0, 0.0  ;;  %v55_v3 = vsel %vm51_vm0, %v50_v1, 0.0  ;;  %v100_v14 = vld [vmem:[#allocation5 + $0x18] sm:$0xff]  ;;  %v99_v15 = vld [vmem:[#allocation5 + $0x10] sm:$0xff]  ;;  %v98_v16 = vld [vmem:[#allocation5 + $0x8] sm:$0xff] }
  0x1e   :  { %53 = vadd.xlane.f32.xlu0 %v52_v2  ;;  %221 = vmatprep.subr.mxu0 %v100_v14  ;;  %v97_v17 = vld [vmem:[#allocation5] sm:$0xff]  ;;  %v210_v25 = vld [vmem:[%s378_s3] ss:$0 sm:$0xff]  ;;  %s311_s3 = smov [#allocation7]  }
  0x1f   :  { %222 = vmatpush3.msra.mxu0 %v100_v14  ;;  %v211_v27 = vld [vmem:[%s379_s4] ss:$0 sm:$0xff]  ;;  %s197_s9 = sshll.u32 %s311_s3, 4  ;;  %s198_s9 = int_to_ptr.vmem [resolvable:$true] %s197_s9 }
  0x20   :  { %223 = vmatprep.subr.mxu0 %v99_v15  ;;  %v212_v34 = vld [vmem:[%s377_s2] ss:$0 sm:$0xff]  ;;  %s281_s4 = scalar_lea.vmem %s198_s9, 256  ;;  %p286_p11 = scmp.lt.s32.totalorder %s198_s9, %s198_s9 }
  0x21   :  { %224 = vmatpush3.msra.mxu0 %v99_v15  ;;  %p282_p10 = scmp.ne.s32.totalorder %s198_s9, %s281_s4  ;;  %p287_p12 = scmp.lt.s32.totalorder %s281_s4, %s281_s4 }
  0x22   :  { %56 = vadd.xlane.f32.xlu0 %v55_v3  ;;  %225 = vmatprep.subr.mxu0 %v98_v16 }
  0x23   :  { %226 = vmatpush3.msra.mxu0 %v98_v16  ;;  %p288_p13 = por %p287_p12, %p286_p11 }
  0x24   :  { %227 = vmatprep.subr.mxu0 %v97_v17 }
  0x25   :  { %228 = vmatpush3.msra.mxu0 %v97_v17  ;;  %p289_p0 = pnand %p288_p13, %p282_p10 }
  0xa7   :  { %v54_v4 = vpop.xlane.xlu0 %53 }
  0xa8   :  { %v59_v5 = vmul.f32 0.03125, %v54_v4 }
  0xaa   :  { %v61_v6 = vsub.f32 %v49_v0, %v59_v5 }
  0xab   :  { %v57_v7 = vpop.xlane.xlu0 %56 }
  0xac   :  { %v60_v8 = vmul.f32 0.03125, %v57_v7  ;;  %v63_v9 = vmul.f32 %v61_v6, %v61_v6 }
  0xae   :  { %v62_v10 = vsub.f32 %v50_v1, %v60_v8  ;;  %v65_v11 = vsel %vm51_vm0, %v63_v9, 0.0 }
  0xaf   :  { %66 = vadd.xlane.f32.xlu1 %v65_v11 }
  0xb0   :  { %v64_v12 = vmul.f32 %v62_v10, %v62_v10 }
  0xb2   :  { %v68_v13 = vsel %vm51_vm0, %v64_v12, 0.0 }
  0xb3   :  { %69 = vadd.xlane.f32.xlu1 %v68_v13 }
 0x138   :  { %v67_v18 = vpop.xlane.xlu1 %66 }
 0x139   :  { %v71_v19 = vmul.f32 0.03125, %v67_v18 }
 0x13b   :  { %v73_v20 = vadd.f32 1e-05, %v71_v19 }
 0x13c   :  { %v70_v21 = vpop.xlane.xlu1 %69 }
 0x13d   :  { %237 = vrsqrt.f32 %v73_v20  ;;  %v72_v22 = vmul.f32 0.03125, %v70_v21 }
 0x13f   :  { %v74_v23 = vadd.f32 1e-05, %v72_v22 }
 0x141   :  { %239 = vrsqrt.f32 %v74_v23 }
 0x14a   :  { %v238_v24 = vpop.eup %237 }
 0x14b   :  { %v77_v26 = vmul.f32 %v238_v24, %v61_v6 }
 0x14d   :  { %v86_v28 = vmul.f32 %v210_v25, %v77_v26 }
 0x14e   :  { %v240_v29 = vpop.eup %239 }
 0x14f   :  { %v78_v30 = vmul.f32 %v240_v29, %v62_v10  ;;  %v95_v31 = vadd.f32 %v211_v27, %v86_v28 }
 0x151   :  { %v87_v32 = vmul.f32 %v210_v25, %v78_v30  ;;  %229 = vmatprep.mubr.msk.f32.mxu0 %vm51_vm0, %v95_v31 }
 0x153   :  { %v96_v33 = vadd.f32 %v211_v27, %v87_v32 }
 0x155   :  { %230 = vmatmul.mubr.msk.f32.vlgmr.msra.gmra.mxu0 %vm51_vm0, %v96_v33 }
 0x215   :  { %v231_v35 = vpop.f32.mrf.mxu0 }
 0x216   :  { %v186_v36 = vadd.f32 %v231_v35, %v212_v34 }
 0x217   :  { %v180_v37 = vpop.f32.mrf.mxu0 }
 0x218   :  { %v181_v38 = vadd.f32 %v212_v34, %v180_v37  ;;  %191 = vst.msk [vmem:[#allocation7 + $0x8] sm:$0xff] %vm189_vm1, %v186_v36 }
 0x21a   :  { %190 = vst.msk [vmem:[#allocation7] sm:$0xff] %vm189_vm1, %v181_v38 }
 0x21b   :  { %292 = shalt.err (!%p289_p0)
}
 0x21c   :  { %203 = dma.vmem_to_hbm [thread:$0]  %s198_s9, 256, %s380_s5, [#allocation4], %s308_s21, %s308_s21, %s309_s22  }
 0x21d   :  { %305 = dma.done.wait [#allocation4], 256  }
 0x21e   :  { %306 = vsyncadd [#allocation4], 4294967040 }
 0x21f   :  { %207 = vsyncpa [#allocation3], 1 }
 0x220   :  { %208 = vsyncpa [#allocation6], 1 }
 0x221   :  { %209 = vsyncpa [#allocation4], 1 }

</bundles_post_ra>
